<compile_context>
chip_gen: v6e
topology: v6e:2x2x1
jax: 0.10.0
libtpu: 0.0.40
codegen_flags: <defaults>
</compile_context>

<pallas_src>
import functools

import jax
import jax.numpy as jnp
from jax.experimental import pallas as pl
from jax.experimental.pallas import tpu as pltpu


def _cdiv(a, b):
    return -(-a // b)


def _round_down(a, b):
    return (a // b) * b


def _tpu_budgets():
    """Generation-aware budgets.

    Returns (vmem_limit_bytes, fused_slab_budget_bytes, tile_budget_bytes,
             cores_per_chip_guess).
    """
    cap = None
    try:
        cap = getattr(pltpu.get_tpu_info(), "vmem_capacity_bytes", None)
    except Exception:
        cap = None
    if cap is None:
        cap = 64 << 20                      # conservative default (v7x-class)
    if cap >= (96 << 20):
        # v5e / v6e: 128 MiB physical VMEM, 1 TensorCore per chip.  Scoped
        # default is only 16/32 MiB, so raise it explicitly.
        return 100 << 20, 12 << 20, 8 << 20, 1
    # v7x-class: 64 MiB physical VMEM per TC, 2 TCs per chip.
    return 44 << 20, 5 << 20, 3 << 20, 2


def _pick_hw_tile(C, HW, itemsize, budget_bytes):
    """Lane-dense HW tile sized directly from the byte budget (multiple of 128)."""
    t = _round_down(max(budget_bytes // max(C * itemsize, 1), 128), 128)
    t = max(t, 128)
    if t >= HW:
        t = HW      # full extent: legal regardless of 128-divisibility
    return t


# ----------------------------------------------------------------------------
# Fused path: one kernel per batch element (whole (C, HW) slab in VMEM).
# ----------------------------------------------------------------------------
def cca_fused_kernel(x_ref, w1_ref, b1_ref, w2_ref, b2_ref, o_ref, *, inv_hw):
    # x_ref : (1, C, HW) native dtype   w1_ref: (Cr, C)   b1_ref: (Cr, 1)
    # o_ref : (1, C, HW) native dtype   w2_ref: (C, Cr)   b2_ref: (C, 1)
    xf = x_ref[...].astype(jnp.float32)

    # Two-pass stats on the VMEM-resident slab (matches the reference
    # E[(x-mean)^2] form; avoids E[x^2]-E[x]^2 cancellation, no extra HBM).
    mean = jnp.sum(xf, axis=-1, keepdims=True) * inv_hw          # (1, C, 1)
    d = xf - mean
    var = jnp.sum(d * d, axis=-1, keepdims=True) * inv_hw        # (1, C, 1)
    y = (jnp.sqrt(var) + mean)[0]                                # (C, 1)

    # Tiny gating MLP (1x1 conv -> ReLU -> 1x1 conv -> Sigmoid); negligible
    # compute next to the HBM traffic.
    h = jnp.dot(w1_ref[...], y, preferred_element_type=jnp.float32) + b1_ref[...]
    h = jnp.maximum(h, 0.0)                                      # (Cr, 1)
    s = jnp.dot(w2_ref[...], h, preferred_element_type=jnp.float32) + b2_ref[...]
    s = jax.nn.sigmoid(s)                                        # (C, 1)

    o_ref[...] = (xf * s[None, :, :]).astype(o_ref.dtype)


# ----------------------------------------------------------------------------
# Tiled path, pass 1: per-(batch, HW-tile) sum / sum-sq accumulation.
# ----------------------------------------------------------------------------
def cca_stats_kernel(x_ref, sum_ref, sumsq_ref, *, hw, tile):
    t = pl.program_id(1)

    @pl.when(t == 0)
    def _():
        sum_ref[...] = jnp.zeros_like(sum_ref)
        sumsq_ref[...] = jnp.zeros_like(sumsq_ref)

    xf = x_ref[...].astype(jnp.float32)                          # (1, C, T)
    if hw % tile != 0:
        # Ragged last tile: out-of-bounds lanes hold undefined data -> mask.
        lane = jax.lax.broadcasted_iota(jnp.int32, xf.shape, 2) + t * tile
        xf = jnp.where(lane < hw, xf, 0.0)

    sum_ref[...] += jnp.sum(xf, axis=-1, keepdims=True)
    sumsq_ref[...] += jnp.sum(xf * xf, axis=-1, keepdims=True)


# ----------------------------------------------------------------------------
# Tiled path, pass 2: out = x * gate  (pure HBM-bandwidth streaming).
# ----------------------------------------------------------------------------
def cca_apply_kernel(x_ref, s_ref, o_ref):
    # (1, C, T) * (1, C, 1); OOB lanes of a ragged last tile are dropped on
    # the masked write-back, so no in-kernel masking is needed here.
    o_ref[...] = (x_ref[...].astype(jnp.float32) * s_ref[...]).astype(o_ref.dtype)


# ----------------------------------------------------------------------------
# Wrapper
# ----------------------------------------------------------------------------
def cca_forward(x, w1, b1, w2, b2, *, hw_tile=None):
    """CCA forward.

    x : (B, C, H, W)   -- any float dtype; streamed HBM<->VMEM in that dtype
    w1: (Cr, C)        -- squeezed weight of the first 1x1 conv (PyTorch layout)
    b1: (Cr,)
    w2: (C, Cr)        -- squeezed weight of the second 1x1 conv
    b2: (C,)
    """
    B, C, H, W = x.shape
    Cr = w1.shape[0]
    HW = H * W
    inv_hw = 1.0 / float(HW)
    dtype = x.dtype
    itemsize = jnp.dtype(dtype).itemsize

    vmem_limit, slab_budget, tile_budget, n_cores = _tpu_budgets()

    x_flat = x.reshape(B, C, HW)                 # contiguous merge: free
    w1f = w1.astype(jnp.float32)
    b1c = b1.reshape(Cr, 1).astype(jnp.float32)
    w2f = w2.astype(jnp.float32)
    b2c = b2.reshape(C, 1).astype(jnp.float32)

    # The in-kernel f32 working set per (1, C, HW) slab dominates VMEM use.
    slab_f32_bytes = C * HW * 4
    use_fused = (hw_tile is None) and (slab_f32_bytes <= slab_budget)
    # Megacore (v7x has 2 TCs): a fused grid of size B < #cores leaves a core
    # idle; prefer the two-pass path (parallel over (B, HW-tiles)) when the
    # slab is big enough for that to matter.
    if use_fused and B < n_cores and slab_f32_bytes > (1 << 20):
        use_fused = False

    if use_fused:
        # Block shape equals the full (C, HW) extents => no (8,128) padding
        # needed and no wrapper-side pad/slice passes over HBM.
        out_flat = pl.pallas_call(
            functools.partial(cca_fused_kernel, inv_hw=inv_hw),
            out_shape=jax.ShapeDtypeStruct((B, C, HW), dtype),
            grid=(B,),
            in_specs=[
                pl.BlockSpec((1, C, HW), lambda b: (b, 0, 0)),
                pl.BlockSpec((Cr, C), lambda b: (0, 0)),
                pl.BlockSpec((Cr, 1), lambda b: (0, 0)),
                pl.BlockSpec((C, Cr), lambda b: (0, 0)),
                pl.BlockSpec((C, 1), lambda b: (0, 0)),
            ],
            out_specs=pl.BlockSpec((1, C, HW), lambda b: (b, 0, 0)),
            compiler_params=pltpu.CompilerParams(
                dimension_semantics=("parallel",),
                vmem_limit_bytes=vmem_limit),
            cost_estimate=pl.CostEstimate(
                flops=6 * B * C * HW + 4 * B * C * Cr,
                transcendentals=2 * B * C,
                bytes_accessed=2 * B * C * HW * itemsize),
        )(x_flat, w1f, b1c, w2f, b2c)
    else:
        # Two-pass scheme: stats pass + apply pass.  No padding: the ragged
        # last HW tile is masked in-kernel (stats) / dropped on store (apply).
        T = hw_tile if hw_tile is not None else _pick_hw_tile(C, HW, itemsize,
                                                              tile_budget)
        if T >= HW:
            T = HW
        n_t = _cdiv(HW, T)

        sums, sumsqs = pl.pallas_call(
            functools.partial(cca_stats_kernel, hw=HW, tile=T),
            out_shape=(jax.ShapeDtypeStruct((B, C, 1), jnp.float32),
                       jax.ShapeDtypeStruct((B, C, 1), jnp.float32)),
            grid=(B, n_t),                        # reduction axis last
            in_specs=[pl.BlockSpec((1, C, T), lambda b, t: (b, 0, t))],
            out_specs=(pl.BlockSpec((1, C, 1), lambda b, t: (b, 0, 0)),
                       pl.BlockSpec((1, C, 1), lambda b, t: (b, 0, 0))),
            compiler_params=pltpu.CompilerParams(
                dimension_semantics=("parallel", "arbitrary"),
                vmem_limit_bytes=vmem_limit),
            cost_estimate=pl.CostEstimate(
                flops=3 * B * C * HW,
                transcendentals=0,
                bytes_accessed=B * C * HW * itemsize + 2 * B * C * 4),
        )(x_flat)

        # Tiny (B, C) gate MLP in plain JAX: keeps the 1x1-conv weights and an
        # N=1 MXU matmul out of the bandwidth-bound reduction loop.
        # NOTE: single-pass E[x^2]-E[x]^2 variance here (clamped); fused path
        # uses the exact two-pass form.
        mean = sums[:, :, 0] * inv_hw                                  # (B, C)
        var = jnp.maximum(sumsqs[:, :, 0] * inv_hw - mean * mean, 0.0)
        y = jnp.sqrt(var) + mean                                       # (B, C)
        h = jnp.maximum(y @ w1f.T + b1.astype(jnp.float32), 0.0)       # (B, Cr)
        s = jax.nn.sigmoid(h @ w2f.T + b2.astype(jnp.float32))         # (B, C)
        s_gate = s[:, :, None]                                         # (B, C, 1)

        out_flat = pl.pallas_call(
            cca_apply_kernel,
            out_shape=jax.ShapeDtypeStruct((B, C, HW), dtype),
            grid=(B, n_t),
            in_specs=[
                pl.BlockSpec((1, C, T), lambda b, t: (b, 0, t)),
                pl.BlockSpec((1, C, 1), lambda b, t: (b, 0, 0)),
            ],
            out_specs=pl.BlockSpec((1, C, T), lambda b, t: (b, 0, t)),
            compiler_params=pltpu.CompilerParams(
                dimension_semantics=("parallel", "parallel"),
                vmem_limit_bytes=vmem_limit),
            cost_estimate=pl.CostEstimate(
                flops=B * C * HW,
                transcendentals=0,
                bytes_accessed=2 * B * C * HW * itemsize + B * C * 4),
        )(x_flat, s_gate)

    return out_flat.reshape(B, C, H, W)


def cca_reference(x, w1, b1, w2, b2):
    """Pure-JAX reference matching the PyTorch module exactly (f32)."""
    xf = x.astype(jnp.float32)
    mean = jnp.mean(xf, axis=(2, 3), keepdims=True)
    var = jnp.mean((xf - mean) ** 2, axis=(2, 3), keepdims=True)
    y = jnp.sqrt(var) + mean                             # (B, C, 1, 1)
    yv = y[:, :, 0, 0]                                   # (B, C)
    h = jnp.maximum(yv @ w1.T + b1, 0.0)                 # (B, Cr)
    s = jax.nn.sigmoid(h @ w2.T + b2)                    # (B, C)
    return xf * s[:, :, None, None]


if __name__ == "__main__":
    # Small shapes consistent with the module: chan=4 -> reduction to chan//4=1
    B, C, H, W = 2, 4, 16, 16
    Cr = max(C // 4, 1)

    key = jax.random.PRNGKey(0)
    kx, kw1, kb1, kw2, kb2, kx2 = jax.random.split(key, 6)

    x = jax.random.normal(kx, (B, C, H, W), dtype=jnp.float32)
    # 1x1 conv weights in PyTorch layout (out_ch, in_ch) squeezed.
    w1 = jax.random.normal(kw1, (Cr, C), dtype=jnp.float32) * 0.5
    b1 = jax.random.normal(kb1, (Cr,), dtype=jnp.float32) * 0.1
    w2 = jax.random.normal(kw2, (C, Cr), dtype=jnp.float32) * 0.5
    b2 = jax.random.normal(kb2, (C,), dtype=jnp.float32) * 0.1

    ref = cca_reference(x, w1, b1, w2, b2)

    # Fused (per-batch full-slab) path.
    out = jax.block_until_ready(cca_forward(x, w1, b1, w2, b2))
    assert out.shape == (B, C, H, W)
    assert jnp.allclose(out, ref, atol=1e-5, rtol=1e-5), "fused path mismatch"

    # Two-pass tiled path (forced 128-lane tiles; HW=256 divides evenly).
    out_tiled = jax.block_until_ready(cca_forward(x, w1, b1, w2, b2, hw_tile=128))
    assert jnp.allclose(out_tiled, ref, atol=1e-5, rtol=1e-5), "tiled path mismatch"

    # Ragged spatial extent (HW=144, not a multiple of 128): fused path needs
    # no padding (block == full dims), tiled path masks the ragged tail.
    xr = jax.random.normal(kx2, (B, C, 12, 12), dtype=jnp.float32)
    ref_r = cca_reference(xr, w1, b1, w2, b2)
    out_r = jax.block_until_ready(cca_forward(xr, w1, b1, w2, b2))
    assert jnp.allclose(out_r, ref_r, atol=1e-5, rtol=1e-5), "ragged fused mismatch"
    out_rt = jax.block_until_ready(cca_forward(xr, w1, b1, w2, b2, hw_tile=128))
    assert jnp.allclose(out_rt, ref_r, atol=1e-5, rtol=1e-5), "ragged tiled mismatch"

    # Native bf16 streaming (halves HBM traffic); relaxed tolerance vs f32 ref.
    x_bf = x.astype(jnp.bfloat16)
    ref_bf = cca_reference(x_bf, w1, b1, w2, b2)
    out_bf = jax.block_until_ready(cca_forward(x_bf, w1, b1, w2, b2))
    assert out_bf.dtype == jnp.bfloat16
    assert jnp.allclose(out_bf.astype(jnp.float32), ref_bf, atol=5e-2, rtol=5e-2), \
        "bf16 fused mismatch"

    print("KERNEL_OK")
</pallas_src>

<mosaic_0001>
module attributes {stable_mosaic.version = 11 : i64} {
  func.func @cca_fused_kernel(%arg0: i32, %arg1: memref<1x4x256xf32, #tpu.memory_space<vmem>>, %arg2: memref<1x4xf32, #tpu.memory_space<vmem>>, %arg3: memref<1x1xf32, #tpu.memory_space<vmem>>, %arg4: memref<4x1xf32, #tpu.memory_space<vmem>>, %arg5: memref<4x1xf32, #tpu.memory_space<vmem>>, %arg6: memref<1x4x256xf32, #tpu.memory_space<vmem>>) attributes {dimension_semantics = [#tpu.dimension_semantics<parallel>], iteration_bounds = array<i64: 2>, scalar_prefetch = 0 : i64, scratch_operands = 0 : i64, tpu.core_type = #tpu.core_type<tc>, window_params = [{transform_indices = @transform_0, window_bounds = array<i64: 1, 4, 256>}, {pipeline_mode = #tpu.pipeline_mode<synchronous>, transform_indices = @transform_1, window_bounds = array<i64: 1, 4>}, {pipeline_mode = #tpu.pipeline_mode<synchronous>, transform_indices = @transform_2, window_bounds = array<i64: 1, 1>}, {pipeline_mode = #tpu.pipeline_mode<synchronous>, transform_indices = @transform_3, window_bounds = array<i64: 4, 1>}, {pipeline_mode = #tpu.pipeline_mode<synchronous>, transform_indices = @transform_4, window_bounds = array<i64: 4, 1>}, {transform_indices = @transform_5, window_bounds = array<i64: 1, 4, 256>}]} {
    %c0 = arith.constant 0 : index
    %c0_0 = arith.constant 0 : index
    %c0_1 = arith.constant 0 : index
    %0 = vector.load %arg1[%c0, %c0_0, %c0_1] : memref<1x4x256xf32, #tpu.memory_space<vmem>>, vector<1x4x256xf32>
    %cst = arith.constant dense<0.000000e+00> : vector<1x4xf32>
    %1 = vector.multi_reduction <add>, %0, %cst [2] : vector<1x4x256xf32> to vector<1x4xf32>
    %2 = vector.shape_cast %1 : vector<1x4xf32> to vector<1x4x1xf32>
    %cst_2 = arith.constant 3.906250e-03 : f32
    %3 = vector.broadcast %cst_2 : f32 to vector<1x4x1xf32>
    %4 = arith.mulf %2, %3 : vector<1x4x1xf32>
    %5 = vector.broadcast %4 : vector<1x4x1xf32> to vector<1x4x256xf32>
    %6 = arith.subf %0, %5 : vector<1x4x256xf32>
    %7 = arith.mulf %6, %6 : vector<1x4x256xf32>
    %cst_3 = arith.constant dense<0.000000e+00> : vector<1x4xf32>
    %8 = vector.multi_reduction <add>, %7, %cst_3 [2] : vector<1x4x256xf32> to vector<1x4xf32>
    %9 = vector.shape_cast %8 : vector<1x4xf32> to vector<1x4x1xf32>
    %cst_4 = arith.constant 3.906250e-03 : f32
    %10 = vector.broadcast %cst_4 : f32 to vector<1x4x1xf32>
    %11 = arith.mulf %9, %10 : vector<1x4x1xf32>
    %12 = math.sqrt %11 : vector<1x4x1xf32>
    %13 = arith.addf %12, %4 : vector<1x4x1xf32>
    %14 = vector.shape_cast %13 : vector<1x4x1xf32> to vector<4x1xf32>
    %c0_5 = arith.constant 0 : index
    %c0_6 = arith.constant 0 : index
    %15 = vector.load %arg2[%c0_5, %c0_6] : memref<1x4xf32, #tpu.memory_space<vmem>>, vector<1x4xf32>
    %cst_7 = arith.constant dense<0.000000e+00> : vector<1x1xf32>
    %16 = tpu.matmul %15, %14, %cst_7 {dimension_numbers = #tpu.dot_dimension_numbers<[1], [0], [0], [1], [0, 0, 1, 1], [], []>} : vector<1x4xf32>, vector<4x1xf32>, vector<1x1xf32> -> vector<1x1xf32>
    %c0_8 = arith.constant 0 : index
    %c0_9 = arith.constant 0 : index
    %17 = vector.load %arg3[%c0_8, %c0_9] : memref<1x1xf32, #tpu.memory_space<vmem>>, vector<1x1xf32>
    %18 = arith.addf %16, %17 : vector<1x1xf32>
    %cst_10 = arith.constant 0.000000e+00 : f32
    %19 = vector.broadcast %cst_10 : f32 to vector<1x1xf32>
    %20 = arith.maximumf %18, %19 : vector<1x1xf32>
    %c0_11 = arith.constant 0 : index
    %c0_12 = arith.constant 0 : index
    %21 = vector.load %arg4[%c0_11, %c0_12] : memref<4x1xf32, #tpu.memory_space<vmem>>, vector<4x1xf32>
    %cst_13 = arith.constant dense<0.000000e+00> : vector<4x1xf32>
    %22 = tpu.matmul %21, %20, %cst_13 {dimension_numbers = #tpu.dot_dimension_numbers<[1], [0], [0], [1], [0, 0, 1, 1], [], []>} : vector<4x1xf32>, vector<1x1xf32>, vector<4x1xf32> -> vector<4x1xf32>
    %c0_14 = arith.constant 0 : index
    %c0_15 = arith.constant 0 : index
    %23 = vector.load %arg5[%c0_14, %c0_15] : memref<4x1xf32, #tpu.memory_space<vmem>>, vector<4x1xf32>
    %24 = arith.addf %22, %23 : vector<4x1xf32>
    %25 = arith.negf %24 : vector<4x1xf32>
    %26 = math.exp %25 : vector<4x1xf32>
    %cst_16 = arith.constant 1.000000e+00 : f32
    %27 = vector.broadcast %cst_16 : f32 to vector<4x1xf32>
    %28 = arith.addf %27, %26 : vector<4x1xf32>
    %29 = arith.divf %27, %28 : vector<4x1xf32>
    %30 = vector.shape_cast %29 : vector<4x1xf32> to vector<1x4x1xf32>
    %31 = vector.broadcast %30 : vector<1x4x1xf32> to vector<1x4x256xf32>
    %32 = arith.mulf %0, %31 : vector<1x4x256xf32>
    %c0_17 = arith.constant 0 : index
    %c0_18 = arith.constant 0 : index
    %c0_19 = arith.constant 0 : index
    %33 = vector.load %arg6[%c0_17, %c0_18, %c0_19] : memref<1x4x256xf32, #tpu.memory_space<vmem>>, vector<1x4x256xf32>
    tpu.vector_store %arg6[%c0_17, %c0_18, %c0_19], %32 {strides = array<i32>} : memref<1x4x256xf32, #tpu.memory_space<vmem>>, vector<1x4x256xf32>,
    return
  }
  func.func @transform_0(%arg0: i32) -> (i32, i32, i32) {
    %c0_i32 = arith.constant 0 : i32
    %c0_i32_0 = arith.constant 0 : i32
    %c0_i32_1 = arith.constant 0 : i32
    return %arg0, %c0_i32, %c0_i32_0 : i32, i32, i32
  }
  func.func @transform_1(%arg0: i32) -> (i32, i32) {
    %c0_i32 = arith.constant 0 : i32
    %c0_i32_0 = arith.constant 0 : i32
    %c0_i32_1 = arith.constant 0 : i32
    return %c0_i32, %c0_i32_0 : i32, i32
  }
  func.func @transform_2(%arg0: i32) -> (i32, i32) {
    %c0_i32 = arith.constant 0 : i32
    %c0_i32_0 = arith.constant 0 : i32
    %c0_i32_1 = arith.constant 0 : i32
    return %c0_i32, %c0_i32_0 : i32, i32
  }
  func.func @transform_3(%arg0: i32) -> (i32, i32) {
    %c0_i32 = arith.constant 0 : i32
    %c0_i32_0 = arith.constant 0 : i32
    %c0_i32_1 = arith.constant 0 : i32
    return %c0_i32, %c0_i32_0 : i32, i32
  }
  func.func @transform_4(%arg0: i32) -> (i32, i32) {
    %c0_i32 = arith.constant 0 : i32
    %c0_i32_0 = arith.constant 0 : i32
    %c0_i32_1 = arith.constant 0 : i32
    return %c0_i32, %c0_i32_0 : i32, i32
  }
  func.func @transform_5(%arg0: i32) -> (i32, i32, i32) {
    %c0_i32 = arith.constant 0 : i32
    %c0_i32_0 = arith.constant 0 : i32
    %c0_i32_1 = arith.constant 0 : i32
    return %arg0, %c0_i32, %c0_i32_0 : i32, i32, i32
  }
}

</mosaic_0001>

<bundles_post_ra>
// kernel: tpu_custom_call.1
= control target key start
LH: loop header
LB: loop body
LE: loop exit
PB: predicated region body
PF: predicated region fallthrough
CT: control target
= control target key end

     0   :  { %s940_s0 = inlined_call_operand.hbm [shape: f32[2,4,256], index: 0, kind: input, shape index: {}]   ;;  %s941_s1 = inlined_call_operand.vmem [shape: f32[1,4], index: 1, kind: input, shape index: {}]   ;;  %s942_s2 = inlined_call_operand.<no memory space> [shape: f32[1,1], index: 2, kind: input, shape index: {}]   ;;  %s943_s3 = inlined_call_operand.vmem [shape: f32[4,1], index: 3, kind: input, shape index: {}]   ;;  %s944_s4 = inlined_call_operand.vmem [shape: f32[4,1], index: 4, kind: input, shape index: {}]   ;;  %s945_s5 = inlined_call_operand.hbm [shape: f32[2,4,256], index: 5, kind: output, shape index: {}]  }
   0x1   :  { %v10_v0 = vstv %s942_s2 }
   0x2   :  { %11 = vst [vmem:[#allocation2] sm:$0x1] %v10_v0 }
   0x3   :  { %12 = vsyncpa [#allocation4], 0 }
   0x4   :  { %14 = vsyncpa [#allocation4 + $0x1], 0 }
   0x5   :  { %15 = vsyncpa [#allocation5], 0 }
   0x6   :  { %17 = vsyncpa [#allocation5 + $0x1], 0  ;;  %s774_s20 = smov 0   ;;  %s776_s21 = smov 0  }
   0x7   :  { %s778_s22 = smov 0   ;;  %s780_s23 = smov 0  }
   0x8 LB: > { %s795_s2 = sadd.s32 4294967295, %s733_s23   ;;  %s547_s24 = sadd.s32 4294967294, %s733_s23   ;;  %s733_s23 = sphi %s780_s23, %s962_s23   ;;  %s729_s22 = sphi %s778_s22, %s961_s22   ;;  %s725_s21 = sphi %s776_s21, %s960_s21   ;;  %s721_s20 = sphi %s774_s20, %s959_s20  }
   0x9   : > { %s799_s25 = sadd.s32 1, %s733_s23   ;;  %s30_s26 = sadd.s32 1, %s729_s22 }
   0xa   : > { %s27_s27 = ssub.s32 %s733_s23, %s799_s25  ;;  %p37_p0 = scmp.ne.s32.totalorder %s729_s22, %s725_s21 }
   0xb   : > { %p28_p1 = scmp.eq.s32.totalorder %s27_s27, 0  ;;  %p38_p2 = scmp.eq.s32.totalorder %s733_s23, 0 }
   0xc   : > { %p43_p3 = scmp.ne.s32.totalorder %s725_s21, %s721_s20  ;;  %p44_p4 = scmp.eq.s32.totalorder %s795_s2, 0 }
   0xd   : > { %s811_s28 = scalar_select %p28_p1, %s729_s22, %s30_s26  }
   0xe   : > { %p813_p5 = por %p38_p2, %p37_p0  ;;  %p817_p6 = por %p44_p4, %p43_p3 }
   0xf   : > { %p151_p7 = scmp.eq.s32.totalorder %s795_s2, 1  ;;  %p157_p8 = scmp.eq.s32.totalorder %s547_s24, 1 }
  0x10   : > { %s949_s30 = scalar_select %p817_p6, 1, 0 }
  0x11   : > { %p594_p10 = scmp.lt.s32.totalorder %s733_s23, 2  ;;  %p824_p11 = por %p151_p7, %p37_p0 }
  0x12   : > { %p828_p12 = por %p157_p8, %p43_p3  ;;  %s189_s8 = sand.u32 1, %s729_s22  }
  0x13   : > { %s950_s6 = scalar_select %p824_p11, 1, 0 }
  0x14   : > { %s951_s7 = scalar_select %p828_p12, 1, 0 }
  0x15   : > { %s566_s9 = sshll.u32 %s733_s23, 7  ;;  %s550_s10 = sshll.u32 %s189_s8, 3 }
  0x16   : > { %s837_s13 = scalar_lea.hbm %s940_s0, %s566_s9  ;;  %s193_s14 = scalar_lea.vmem [#allocation3], %s550_s10 }
  0x17   : > { %s201_s15 = sshll.u32 %s193_s14, 4  ;;  %p841_p13 = pnand %p594_p10, %p813_p5  ;;  %s845_s15 = int_to_ptr.vmem [resolvable:$true] %s201_s15 }
  0x18   : > { %s190_s17 = scalar_lea.sflag [#allocation4], %s189_s8  ;;  %s641_s18 = scalar_lea.hbm %s837_s13, 128 }
  0x19   : > { %p642_p2 = scmp.ne.s32.totalorder %s837_s13, %s641_s18  ;;  %p643_p3 = pneg %p841_p13 }
  0x1a   : > { %s646_s26 = scalar_lea.hbm %s940_s0, 256  ;;  %p647_p5 = scmp.lt.s32.totalorder %s837_s13, %s940_s0 }
  0x1b   : > { %p644_p4 = pnand %p643_p3, %p642_p2  ;;  %p648_p8 = scmp.lt.s32.totalorder %s646_s26, %s641_s18 }
  0x1d   : > { %p645_p7 = pneg %p644_p4  ;;  %p649_p10 = por %p648_p8, %p647_p5 }
  0x1f   : > { %p650_p9 = pnand %p649_p10, %p645_p7 }
  0x21   : > { %653 = shalt.err (!%p650_p9)
}
  0x22   : > { %s654_s8 = scalar_lea.vmem %s845_s15, 128  ;;  %s735_s9 = smov [#allocation3]  }
  0x23   : > { %p655_p0 = scmp.ne.s32.totalorder %s845_s15, %s654_s8  ;;  %s659_s10 = sshll.u32 %s735_s9, 4  ;;  %s660_s10 = int_to_ptr.vmem [resolvable:$false] %s659_s10 }
  0x24   : > { %s661_s11 = scalar_lea.vmem %s660_s10, 256  ;;  %p662_p4 = scmp.lt.s32.totalorder %s845_s15, %s660_s10 }
  0x25   : > { %p657_p1 = pnand %p655_p0, %p643_p3  ;;  %p663_p12 = scmp.lt.s32.totalorder %s661_s11, %s654_s8 }
  0x27   : > { %p658_p2 = pneg %p657_p1  ;;  %p664_p11 = por %p663_p12, %p662_p4 }
  0x29   : > { %p665_p6 = pnand %p664_p11, %p658_p2 }
  0x2b   : > { %668 = shalt.err (!%p665_p6)
}
  0x2c   : > { %589 = dma.hbm_to_vmem [thread:$0]  (!%p841_p13), %s837_s13, 128, %s845_s15, %s190_s17  }
  0x2d   : > { %p953_p9 = scmp.lt.s32.totalorder %s733_s23, 3  ;;  %p954_p7 = scmp.ge.s32.totalorder %s733_s23, 1 }
  0x2f   : > { %p207_p0 = pnand %p954_p7, %p953_p9 }
  0x30   : > { %s872_s12 = sand.u32 (!%p207_p0), 1, %s725_s21   ;;  %p955_p6 = scmp.ne.s32.totalorder (!%p207_p0), %s949_s30, 0 }
  0x31   : > { %210 = sbr.rel (%p207_p0) target bundleno = 939 (0x3ab), region = 40  ;;  %s554_s14 = sshll.u32 (!%p207_p0), %s872_s12, 3 }
  0x32   : > { %s213_s18 = scalar_lea.sflag (!%p207_p0), [#allocation4], %s872_s12  ;;  %s216_s16 = scalar_lea.vmem (!%p207_p0), [#allocation3], %s554_s14 }
  0x36   : > { %712 = dma.done.wait (%p955_p6), %s213_s18, 128  }
  0x37   : > { %714 = vsyncadd (%p955_p6), %s213_s18, 4294967168  ;;  %vm247_vm0 = vcmask 1043456   ;;  %v882_v1 = vld [vmem:[%s216_s16] sm:$0xff]  ;;  %v736_v6 = vmov 839922192   ;;  %v258_v8 = vlaneseq  ;;  %v737_v21 = vmov 0.0  }
  0x38   : > { %v245_v2 = vcombine.high %v882_v1, %v882_v1  ;;  %v248_v3 = vsel %vm247_vm0, %v882_v1, 0.0  ;;  %v256_v7 = vunpack.c.l.s4 %v736_v6  ;;  %572 = vmatprep.subr.mxu0 %v737_v21  ;;  %577 = vmatprep.subr.mxu1 %v737_v21  ;;  %vm738_vm1 = vmmov 0   ;;  %v282_v30 = vld [vmem:[%s941_s1] sm:$0x1]  ;;  %s567_s26 = sshll.u32 %s795_s2, 7  ;;  %s242_s27 = scalar_lea.vmem [#allocation6], %s554_s14 }
  0x39   : > { %v259_v10 = vshrl.u32 %v258_v8, 7  ;;  %574 = vmatprep.mubr.msk.f32.mxu0 %vm738_vm1, %v737_v21  ;;  %579 = vmatprep.mubr.msk.f32.mxu1 %vm738_vm1, %v737_v21  ;;  %vm284_vm4 = vcmask 31744   ;;  %v283_v31 = vld [vmem:[#allocation2] sm:$0x1]  ;;  %vm368_vm5 = vcmask 1040384   ;;  %vm364_vm6 = vcmask 7168   ;;  %s475_s10 = scalar_lea.hbm %s945_s5, %s567_s26 }
  0x3a   : > { %v249_v4 = vsel %vm247_vm0, %v245_v2, 0.0  ;;  %v257_v9 = vunpack.c.0.s8 %v256_v7  ;;  %v362_v36 = vld [vmem:[%s943_s3] sm:$0xf]  ;;  %v739_v37 = vmov 0   ;;  %s477_s29 = sshll.u32 %s242_s27, 4  ;;  %s463_s11 = scalar_lea.sflag [#allocation5], %s872_s12  ;;  %s478_s29 = int_to_ptr.vmem [resolvable:$true] %s477_s29 }
  0x3b   : > { %v250_v5 = vadd.f32 %v249_v4, %v248_v3  ;;  %632 = vset.pattern.permute.xlu1 %v739_v37  ;;  %633 = vset.pattern.permute.xlu0 %v739_v37  ;;  %v363_v38 = vld [vmem:[%s944_s4] sm:$0xf]  ;;  %s669_s18 = scalar_lea.vmem %s478_s29, 128  ;;  %p956_p12 = scmp.ne.s32.totalorder %s950_s6, 0 }
  0x3c   : > { %v260_v11 = vsub.s32 %v257_v9, %v259_v10  ;;  %p670_p11 = scmp.ne.s32.totalorder %s478_s29, %s669_s18  ;;  %s740_s16 = smov [#allocation6]  }
  0x3d   : > { %251 = vadd.xlane.f32.xlu0 %v250_v5  ;;  %s673_s2 = sshll.u32 %s740_s16, 4  ;;  %s674_s2 = int_to_ptr.vmem [resolvable:$false] %s673_s2 }
  0x3e   : > { %p671_p13 = pnand %p670_p11, %p956_p12  ;;  %s675_s14 = scalar_lea.vmem %s674_s2, 256 }
  0x3f   : > { %p676_p3 = scmp.lt.s32.totalorder %s478_s29, %s674_s2  ;;  %p677_p5 = scmp.lt.s32.totalorder %s675_s14, %s669_s18 }
  0x40   : > { %p672_p1 = pneg %p671_p13 }
  0x41   : > { %p678_p8 = por %p677_p5, %p676_p3 }
  0x43   : > { %p679_p10 = pnand %p678_p8, %p672_p1 }
  0xc6   : > { %v252_v12 = vpop.xlane.xlu0 %251 }
  0xc7   : > { %v253_v13 = vmul.f32 0.00390625, %v252_v12 }
  0xc9   : > { %v261_v14 = vrot.slane %v253_v13, %v260_v11 }
  0xcb   : > { %v263_v15 = vsub.f32 %v882_v1, %v261_v14 }
  0xcd   : > { %v264_v16 = vmul.f32 %v263_v15, %v263_v15 }
  0xcf   : > { %v266_v17 = vcombine.high %v264_v16, %v264_v16  ;;  %v268_v18 = vsel %vm247_vm0, %v264_v16, 0.0 }
  0xd1   : > { %v269_v19 = vsel %vm247_vm0, %v266_v17, 0.0 }
  0xd2   : > { %v270_v20 = vadd.f32 %v269_v19, %v268_v18 }
  0xd4   : > { %271 = vadd.xlane.f32.xlu0 %v270_v20 }
 0x15d   : > { %v272_v22 = vpop.xlane.xlu0 %271 }
 0x15e   : > { %v273_v23 = vmul.f32 0.00390625, %v272_v22 }
 0x160   : > { %635 = vrsqrt.f32 %v273_v23  ;;  %vm276_vm2 = vcmp.eq.f32.partialorder %v273_v23, inf  ;;  %v279_v26 = vand.u32 2147483648, %v273_v23  ;;  %vm278_vm3 = vcmp.eq.f32.partialorder %v273_v23, 0.0 }
 0x16d   : > { %v636_v24 = vpop.eup %635 }
 0x16e   : > { %v275_v25 = vmul.f32 %v636_v24, %v273_v23 }
 0x170   : > { %v277_v27 = vsel %vm276_vm2, %v273_v23, %v275_v25 }
 0x171   : > { %v280_v28 = vsel %vm278_vm3, %v279_v26, %v277_v27 }
 0x172   : > { %v281_v29 = vadd.f32 %v280_v28, %v253_v13 }
 0x174   : > { %573 = vmatpush3.msk.msra.mxu0 %vm247_vm0, %v281_v29 }
 0x175   : > { %575 = vmatmul.mubr.msk.f32.vlgmr.msra.gmra.mxu0 %vm284_vm4, %v282_v30 }
 0x235   : > { %v357_v32 = vpop.f32.mrf.mxu0 }
 0x236   : > { %v358_v33 = vadd.f32 %v357_v32, %v283_v31 }
 0x237   : > { %v576_v34 = vpop.f32.mrf.mxu0 }
 0x238   : > { %v361_v35 = vmax.f32 %v358_v33, 0.0 }
 0x23a   : > { %578 = vmatpush3.msk.msra.mxu1 %vm368_vm5, %v361_v35 }
 0x23b   : > { %580 = vmatmul.mubr.msk.f32.vlgmr.msra.gmra.mxu1 %vm364_vm6, %v362_v36 }
 0x2fb   : > { %v438_v39 = vpop.f32.mrf.mxu1 }
 0x2fc   : > { %v439_v40 = vadd.f32 %v438_v39, %v363_v38 }
 0x2fd   : > { %v581_v41 = vpop.f32.mrf.mxu1 }
 0x2fe   : > { %v560_v42 = vmul.f32 -1.442695, %v439_v40 }
 0x300   : > { %637 = vpow2.f32 %v560_v42 }
 0x30d   : > { %v638_v43 = vpop.eup %637 }
 0x30e   : > { %v445_v44 = vadd.f32 1.0, %v638_v43 }
 0x310   : > { %639 = vrcp.f32 %v445_v44 }
 0x31d   : > { %v640_v45 = vpop.eup %639 }
 0x31e   : > { %450 = vperm.xlu1 %632, %v640_v45  }
 0x399   : > { %v451_v46 = vpop.permute.xlu1 %450 }
 0x39a   : > { %v458_v47 = vrot.slane %v451_v46, %v260_v11 }
 0x39c   : > { %v460_v48 = vmul.f32 %v458_v47, %v882_v1 }
 0x39e   : > { %461 = vst [vmem:[%s242_s27] sm:$0xff] %v460_v48 }
 0x39f   : > { %682 = shalt.err (!%p679_p10)
}
 0x3a0   : > { %s683_s30 = scalar_lea.hbm %s475_s10, 128  ;;  %s687_s15 = scalar_lea.hbm %s945_s5, 256 }
 0x3a1   : > { %p684_p2 = scmp.ne.s32.totalorder %s475_s10, %s683_s30  ;;  %p688_p7 = scmp.lt.s32.totalorder %s475_s10, %s945_s5 }
 0x3a2   : > { %p689_p0 = scmp.lt.s32.totalorder %s687_s15, %s683_s30 }
 0x3a3   : > { %p685_p4 = pnand %p684_p2, %p956_p12 }
 0x3a4   : > { %p690_p6 = por %p689_p0, %p688_p7 }
 0x3a5   : > { %p686_p9 = pneg %p685_p4 }
 0x3a7   : > { %p691_p11 = pnand %p690_p6, %p686_p9 }
 0x3a9   : > { %694 = shalt.err (!%p691_p11)
}
 0x3aa   : > { %584 = dma.vmem_to_hbm [thread:$0]  (%p956_p12), %s478_s29, 128, %s475_s10, %s463_s11  }
 0x3ab PF: > { %s489_s24 = sand.u32 1, %s721_s20   ;;  %p957_p13 = scmp.ne.s32.totalorder %s951_s7, 0 }
 0x3ac   : > { %p958_p1 = scmp.ge.s32.totalorder %s733_s23, 2  ;;  %s490_s26 = scalar_lea.sflag [#allocation5], %s489_s24 }
 0x3ae   : > { %p591_p3 = pnand %p958_p1, %p957_p13 }
 0x3b0   : > { %p592_p5 = pneg %p591_p3 }
 0x3b2   : > { %716 = dma.done.wait (%p592_p5), %s490_s26, 128  }
 0x3b3   : > { %718 = vsyncadd (%p592_p5), %s490_s26, 4294967168  ;;  %p20_p8 = scmp.ge.s32.totalorder %s799_s25, 4   ;;  %s959_s20 = smov %s725_s21 }
 0x3b4   : > { %s960_s21 = smov %s729_s22  ;;  %s961_s22 = smov %s811_s28 }
 0x3b5   : > { %s962_s23 = smov %s799_s25  ;;  %22 = sbr.rel (!%p20_p8) target bundleno = 8 (0x8), region = 85 }
 0x3ba   :  { %495 = vsyncpa [#allocation4], 1 }
 0x3bb   :  { %497 = vsyncpa [#allocation4 + $0x1], 1 }
 0x3bc   :  { %498 = vsyncpa [#allocation5], 1 }
 0x3bd   :  { %500 = vsyncpa [#allocation5 + $0x1], 1 }

</bundles_post_ra>
